<compile_context>
chip_gen: v5e
topology: v5e:2x2
jax: 0.10.0
libtpu: 0.0.40
codegen_flags: <defaults>
</compile_context>

<pallas_src>
import jax
import jax.numpy as jnp
from jax.experimental import pallas as pl
from jax.experimental.pallas import tpu as pltpu


def _round_up(x: int, m: int) -> int:
    return ((x + m - 1) // m) * m


def attention_kernel(lstm_ref, enc_ref, w_ref, out_ref):
    # lstm_ref, enc_ref : (tm, H)  VMEM tiles of flattened batch*seq rows
    # w_ref             : (2, H)   packed [fc1.weight; fc2.weight]
    # out_ref           : (tm, 1)  per-row score, natural sublane layout
    lstm = lstm_ref[...].astype(jnp.float32)
    enc = enc_ref[...].astype(jnp.float32)
    w = w_ref[...].astype(jnp.float32)

    # Fused fc1 + fc2: one VPU multiply-add, then ONE cross-lane (XLU) reduce.
    # Result stays (tm, 1) -- no lane-major relayout of a width-1 result.
    combined = lstm * w[0:1, :] + enc * w[1:2, :]
    x = jnp.sum(combined, axis=-1, keepdims=True)          # (tm, 1)
    out_ref[...] = jnp.tanh(x).astype(out_ref.dtype)


def pack_attention_weights(w1, w2):
    """Pack fc1/fc2 (1, H) weights into one (2, H) operand (hoisted out of the per-call path)."""
    return jnp.concatenate([w1, w2], axis=0)


def attention_forward(lstm_out, encoder_outputs, w_packed, seq_length, *,
                      block_rows=4096, vmem_budget_bytes=12 << 20):
    """tanh(fc1(lstm_out) + fc2(encoder_outputs)).view(-1, seq_length) via Pallas."""
    B, S, H = lstm_out.shape
    assert S == seq_length
    assert encoder_outputs.shape == (B, S, H)
    assert w_packed.shape == (2, H)
    N = B * S
    itemsize = jnp.dtype(lstm_out.dtype).itemsize

    # Flatten batch*seq so the kernel sees a plain (rows, hidden) problem.
    # (Contiguous reshape: no extra HBM pass.)
    lstm2d = lstm_out.reshape(N, H)
    enc2d = encoder_outputs.reshape(N, H)

    # Tile-row selection:
    #   * cap by the double-buffered VMEM working set
    #     (2 inputs x 2 buffers x tm x H x itemsize <= vmem_budget_bytes),
    #   * keep tm a multiple of 128 (sublane/lane alignment),
    #   * balance tiles so the tail block isn't mostly out-of-bounds.
    bytes_per_row = 2 * 2 * H * itemsize
    max_rows = max(128, (vmem_budget_bytes // bytes_per_row) // 128 * 128)
    tm_cap = max(128, min(_round_up(block_rows, 128), max_rows))
    if N <= tm_cap:
        tm = N                                   # single block; block dims == array dims
    else:
        n_tiles = pl.cdiv(N, tm_cap)
        tm = _round_up(pl.cdiv(N, n_tiles), 128)

    # No input padding: tail block reads unspecified rows; those rows only feed
    # tail outputs, which the (N, 1) out_shape writeback masking discards.
    grid = (pl.cdiv(N, tm),)

    # Raise the scoped-VMEM limit only when the working set needs it
    # (keeps the default path safe on v5e's 16 MiB default; cap well under
    # v7x's 64 MiB physical VMEM).
    ws_bytes = (2 * 2 * tm * H + 2 * 2 * tm + 2 * H) * itemsize
    vmem_limit = None
    if ws_bytes > (12 << 20):
        vmem_limit = min(max(int(ws_bytes * 3 // 2), 16 << 20), 32 << 20)

    out = pl.pallas_call(
        attention_kernel,
        out_shape=jax.ShapeDtypeStruct((N, 1), lstm_out.dtype),
        grid=grid,
        in_specs=[
            pl.BlockSpec((tm, H), lambda i: (i, 0)),
            pl.BlockSpec((tm, H), lambda i: (i, 0)),
            pl.BlockSpec((2, H), lambda i: (0, 0)),
        ],
        out_specs=pl.BlockSpec((tm, 1), lambda i: (i, 0)),
        compiler_params=pltpu.CompilerParams(
            dimension_semantics=("parallel",),
            vmem_limit_bytes=vmem_limit,
        ),
    )(lstm2d, enc2d, w_packed)

    return out.reshape(-1, seq_length)     # == PyTorch out.view(-1, seq_length)


def _reference(lstm_out, encoder_outputs, w1, w2, seq_length):
    # Pure elementwise-multiply + sum reference (no MXU precision ambiguity).
    x1 = jnp.sum(lstm_out * w1[0], axis=-1)
    x2 = jnp.sum(encoder_outputs * w2[0], axis=-1)
    return jnp.tanh(x1 + x2).reshape(-1, seq_length)


def _make_case(key, B, S, H):
    k1, k2, k3, k4 = jax.random.split(key, 4)
    lstm_out = jax.random.normal(k1, (B, S, H), dtype=jnp.float32)
    encoder_outputs = jax.random.normal(k2, (B, S, H), dtype=jnp.float32)
    bound = 1.0 / (H ** 0.5)  # PyTorch nn.Linear default init range
    w1 = jax.random.uniform(k3, (1, H), minval=-bound, maxval=bound, dtype=jnp.float32)
    w2 = jax.random.uniform(k4, (1, H), minval=-bound, maxval=bound, dtype=jnp.float32)
    return lstm_out, encoder_outputs, w1, w2


if __name__ == "__main__":
    key = jax.random.PRNGKey(0)
    k_small, k_big = jax.random.split(key, 2)

    # Case 1: toy size (single full-array block, grid=(1,)).
    B, S, H = 2, 8, 32
    lstm_out, encoder_outputs, w1, w2 = _make_case(k_small, B, S, H)
    w_packed = pack_attention_weights(w1, w2)
    out = attention_forward(lstm_out, encoder_outputs, w_packed, seq_length=S)
    out = jax.block_until_ready(out)
    ref = _reference(lstm_out, encoder_outputs, w1, w2, S)
    assert out.shape == (B, S), out.shape
    assert jnp.allclose(out, ref, atol=1e-5), "mismatch vs reference (toy case)"

    # Case 2: larger size exercising the un-padded cdiv-grid path with a
    # partial tail block (N = 3*300 = 900 rows -> tm = 256, grid = (4,),
    # last block only 132 valid rows, no wrapper-side jnp.pad).
    B2, S2, H2 = 3, 300, 128
    lstm_out2, encoder_outputs2, w1b, w2b = _make_case(k_big, B2, S2, H2)
    w_packed2 = pack_attention_weights(w1b, w2b)
    out2 = attention_forward(lstm_out2, encoder_outputs2, w_packed2, seq_length=S2,
                             block_rows=256)
    out2 = jax.block_until_ready(out2)
    ref2 = _reference(lstm_out2, encoder_outputs2, w1b, w2b, S2)
    assert out2.shape == (B2, S2), out2.shape
    assert jnp.allclose(out2, ref2, atol=1e-5), "mismatch vs reference (tiled case)"

    print("KERNEL_OK")
</pallas_src>

<mosaic_0001>
module attributes {stable_mosaic.version = 11 : i64} {
  func.func @attention_kernel(%arg0: i32, %arg1: memref<16x32xf32, #tpu.memory_space<vmem>>, %arg2: memref<16x32xf32, #tpu.memory_space<vmem>>, %arg3: memref<2x32xf32, #tpu.memory_space<vmem>>, %arg4: memref<16x1xf32, #tpu.memory_space<vmem>>) attributes {dimension_semantics = [#tpu.dimension_semantics<parallel>], iteration_bounds = array<i64: 1>, scalar_prefetch = 0 : i64, scratch_operands = 0 : i64, tpu.core_type = #tpu.core_type<tc>, window_params = [{transform_indices = @transform_0, window_bounds = array<i64: 16, 32>}, {transform_indices = @transform_1, window_bounds = array<i64: 16, 32>}, {pipeline_mode = #tpu.pipeline_mode<synchronous>, transform_indices = @transform_2, window_bounds = array<i64: 2, 32>}, {transform_indices = @transform_3, window_bounds = array<i64: 16, 1>}]} {
    %c0 = arith.constant 0 : index
    %c0_0 = arith.constant 0 : index
    %0 = vector.load %arg1[%c0, %c0_0] : memref<16x32xf32, #tpu.memory_space<vmem>>, vector<16x32xf32>
    %c0_1 = arith.constant 0 : index
    %c0_2 = arith.constant 0 : index
    %1 = vector.load %arg2[%c0_1, %c0_2] : memref<16x32xf32, #tpu.memory_space<vmem>>, vector<16x32xf32>
    %c0_3 = arith.constant 0 : index
    %c0_4 = arith.constant 0 : index
    %2 = vector.load %arg3[%c0_3, %c0_4] : memref<2x32xf32, #tpu.memory_space<vmem>>, vector<2x32xf32>
    %3 = vector.extract_strided_slice %2 {offsets = [0, 0], sizes = [1, 32], strides = [1, 1]} : vector<2x32xf32> to vector<1x32xf32>
    %4 = vector.broadcast %3 : vector<1x32xf32> to vector<16x32xf32>
    %5 = arith.mulf %0, %4 : vector<16x32xf32>
    %6 = vector.extract_strided_slice %2 {offsets = [1, 0], sizes = [1, 32], strides = [1, 1]} : vector<2x32xf32> to vector<1x32xf32>
    %7 = vector.broadcast %6 : vector<1x32xf32> to vector<16x32xf32>
    %8 = arith.mulf %1, %7 : vector<16x32xf32>
    %9 = arith.addf %5, %8 : vector<16x32xf32>
    %cst = arith.constant dense<0.000000e+00> : vector<16xf32>
    %10 = vector.multi_reduction <add>, %9, %cst [1] : vector<16x32xf32> to vector<16xf32>
    %11 = vector.shape_cast %10 : vector<16xf32> to vector<16x1xf32>
    %12 = math.tanh %11 : vector<16x1xf32>
    %c0_5 = arith.constant 0 : index
    %c0_6 = arith.constant 0 : index
    %13 = vector.load %arg4[%c0_5, %c0_6] : memref<16x1xf32, #tpu.memory_space<vmem>>, vector<16x1xf32>
    tpu.vector_store %arg4[%c0_5, %c0_6], %12 {strides = array<i32>} : memref<16x1xf32, #tpu.memory_space<vmem>>, vector<16x1xf32>,
    return
  }
  func.func @transform_0(%arg0: i32) -> (i32, i32) {
    %c0_i32 = arith.constant 0 : i32
    %c0_i32_0 = arith.constant 0 : i32
    return %arg0, %c0_i32 : i32, i32
  }
  func.func @transform_1(%arg0: i32) -> (i32, i32) {
    %c0_i32 = arith.constant 0 : i32
    %c0_i32_0 = arith.constant 0 : i32
    return %arg0, %c0_i32 : i32, i32
  }
  func.func @transform_2(%arg0: i32) -> (i32, i32) {
    %c0_i32 = arith.constant 0 : i32
    %c0_i32_0 = arith.constant 0 : i32
    %c0_i32_1 = arith.constant 0 : i32
    return %c0_i32, %c0_i32_0 : i32, i32
  }
  func.func @transform_3(%arg0: i32) -> (i32, i32) {
    %c0_i32 = arith.constant 0 : i32
    %c0_i32_0 = arith.constant 0 : i32
    return %arg0, %c0_i32 : i32, i32
  }
}

</mosaic_0001>

<bundles_post_ra>
// kernel: tpu_custom_call.1
= control target key start
LH: loop header
LB: loop body
LE: loop exit
PB: predicated region body
PF: predicated region fallthrough
CT: control target
= control target key end

     0   :  { %8 = vsyncpa [#allocation3], 0  ;;  %s215_s0 = inlined_call_operand.hbm [shape: f32[16,32], index: 0, kind: input, shape index: {}]   ;;  %s216_s1 = inlined_call_operand.hbm [shape: f32[16,32], index: 1, kind: input, shape index: {}]   ;;  %s217_s2 = inlined_call_operand.hbm [shape: f32[2,32], index: 2, kind: input, shape index: {}]   ;;  %s218_s3 = inlined_call_operand.vmem [shape: f32[16,1], index: 3, kind: output, shape index: {}]  }
   0x1   :  { %9 = vsyncpa [#allocation5], 0  ;;  %s27_s14 = sshll.u32 %s216_s1, 4  ;;  %s175_s15 = smov [#allocation4]   ;;  %s28_s14 = int_to_ptr.hbm [resolvable:$true] %s27_s14 }
   0x2   :  { %s29_s16 = sshll.u32 %s175_s15, 4  ;;  %s14_s19 = sshll.u32 %s215_s0, 4  ;;  %s30_s16 = int_to_ptr.vmem [resolvable:$true] %s29_s16  ;;  %s15_s19 = int_to_ptr.hbm [resolvable:$true] %s14_s19 }
   0x3   :  { %s176_s20 = smov 128   ;;  %s177_s21 = smov 8  }
   0x4   :  { %35 = dma.hbm_to_vmem [thread:$0]  %s28_s14, 256, %s30_s16, [#allocation5], %s176_s20, %s176_s20, %s177_s21  }
   0x5   :  { %s178_s22 = smov [#allocation2]   ;;  %s41_s26 = sshll.u32 %s217_s2, 4  ;;  %s42_s26 = int_to_ptr.hbm [resolvable:$true] %s41_s26 }
   0x6   :  { %s16_s23 = sshll.u32 %s178_s22, 4  ;;  %s179_s1 = smov [#allocation6]   ;;  %s17_s23 = int_to_ptr.vmem [resolvable:$true] %s16_s23 }
   0x7   :  { %22 = dma.hbm_to_vmem [thread:$0]  %s15_s19, 256, %s17_s23, [#allocation3], %s176_s20, %s176_s20, %s177_s21  }
   0x8   :  { %s43_s27 = sshll.u32 %s179_s1, 4  ;;  %s44_s27 = int_to_ptr.vmem [resolvable:$true] %s43_s27 }
   0x9   :  { %46 = dma.hbm_to_vmem [thread:$0]  %s42_s26, 32, %s44_s27, [#allocation5]  }
   0xa   :  { %171 = dma.done.wait [#allocation3], 256  }
   0xb   :  { %172 = vsyncadd [#allocation3], 4294967040 }
   0xc   :  { %173 = dma.done.wait [#allocation5], 288  }
   0xd   :  { %174 = vsyncadd [#allocation5], 4294967008  ;;  %v59_v0 = vld [vmem:[#allocation2] sm:$0xff]  ;;  %v61_v1 = vld [vmem:[#allocation4] sm:$0xff]  ;;  %vm72_vm0 = vcmask 261120   ;;  %vm81_vm1 = vcmask 7168  }
   0xe   :  { %v63_v2 = vld [vmem:[#allocation6] sm:$0x3]  ;;  %v60_v5 = vld [vmem:[#allocation2 + $0x8] sm:$0xff]  ;;  %v62_v6 = vld [vmem:[#allocation4 + $0x8] sm:$0xff] }
   0xf   :  { %v64_v3 = vperm.slane %v63_v2, 0  ;;  %v67_v4 = vperm.slane %v63_v2, 1 }
  0x11   :  { %v65_v7 = vmul.f32 %v64_v3, %v59_v0  ;;  %v68_v8 = vmul.f32 %v67_v4, %v61_v1  ;;  %v66_v10 = vmul.f32 %v64_v3, %v60_v5  ;;  %v69_v11 = vmul.f32 %v67_v4, %v62_v6 }
  0x13   :  { %v70_v9 = vadd.f32 %v68_v8, %v65_v7  ;;  %v71_v13 = vadd.f32 %v69_v11, %v66_v10 }
  0x15   :  { %v73_v12 = vsel %vm72_vm0, %v70_v9, 0.0  ;;  %v76_v14 = vsel %vm72_vm0, %v71_v13, 0.0 }
  0x16   :  { %74 = vadd.xlane.f32.xlu0 %v73_v12 }
  0x1e   :  { %77 = vadd.xlane.f32.xlu0 %v76_v14 }
  0x89   :  { %v75_v15 = vpop.xlane.xlu0 %74 }
  0x8a   :  { %95 = vtanh.f32 %v75_v15 }
  0x90   :  { %v96_v16 = vpop.eup %95 }
  0x91   :  { %82 = vst.msk [vmem:[%s218_s3] sm:$0xff] %vm81_vm1, %v96_v16  ;;  %v78_v17 = vpop.xlane.xlu0 %77 }
  0x92   :  { %97 = vtanh.f32 %v78_v17 }
  0x98   :  { %v98_v18 = vpop.eup %97 }
  0x99   :  { %83 = vst.msk [vmem:[%s218_s3 + $0x8] sm:$0xff] %vm81_vm1, %v98_v18 }
  0x9a   :  { %88 = vsyncpa [#allocation3], 1 }
  0x9b   :  { %89 = vsyncpa [#allocation5], 1 }

</bundles_post_ra>
